<compile_context>
chip_gen: v7x
topology: tpu7x:2x2x1
jax: 0.10.0
libtpu: 0.0.40
codegen_flags: <defaults>
</compile_context>

<pallas_src>
import jax
import jax.numpy as jnp
from jax.experimental import pallas as pl
from jax.experimental.pallas import tpu as pltpu


def energy_mlp_kernel(x_ref, w1_ref, b1_ref, w2_ref, b2_ref, e_ref):
    # x: (TB, D) f32 | w1: (D, H) bf16 | b1: (1, H) f32 | w2: (1, H) f32
    # b2: (1,) f32 in SMEM | e: (TB, 1) f32
    x_bf = x_ref[...].astype(jnp.bfloat16)            # in-kernel cast (no extra HBM pass)
    h = jnp.dot(x_bf, w1_ref[...], preferred_element_type=jnp.float32)
    h = jnp.maximum(h + b1_ref[...], 0.0)              # bias + ReLU on VPU (f32)
    # Second layer as VPU multiply + lane (XLU) reduction; keepdims keeps the
    # per-row energies on the sublane axis -> native layout for the (TB,1) store.
    e = jnp.sum(h * w2_ref[...], axis=-1, keepdims=True) + b2_ref[0]
    e_ref[...] = e.astype(e_ref.dtype)


def energy_model_forward(x, w1, b1, w2, b2, *, tb=1024):
    """x: [B, D] f32, w1: [D, H], b1: [H]-like, w2: [H, 1]-like, b2: scalar-like.

    Returns energies of shape [B, 1] float32 (same semantics as
    EnergyModel.forward with the MLP energy head). Numerics: x and W1 are
    rounded to bf16 for the MXU; accumulation, bias, ReLU and the w2 reduction
    stay f32."""
    B, D = x.shape
    H = w1.shape[1]

    # Don't allocate a tile larger than the (8-row aligned) batch.
    tb = int(max(8, min(tb, pl.cdiv(B, 8) * 8)))
    grid = (pl.cdiv(B, tb),)

    # Weights: one-time bf16 cast for W1 (tiny, VMEM-resident); biases / w2 f32.
    w1_bf = w1.astype(jnp.bfloat16)
    b1_row = jnp.asarray(b1, jnp.float32).reshape(1, H)
    w2_row = jnp.asarray(w2, jnp.float32).reshape(1, H)
    b2_sc = jnp.asarray(b2, jnp.float32).reshape(1)

    # VMEM budget: double-buffered f32 x tiles + resident weights + output,
    # with headroom, capped at 48 MiB so it also fits v7x's 64 MiB per-TC VMEM.
    x_bytes = 2 * tb * D * 4
    w_bytes = D * H * 2 + 2 * H * 4
    o_bytes = 2 * tb * 4
    vmem_limit = int(min(max(x_bytes + w_bytes + o_bytes + (4 << 20), 32 << 20),
                         48 << 20))

    out = pl.pallas_call(
        energy_mlp_kernel,
        out_shape=jax.ShapeDtypeStruct((B, 1), jnp.float32),
        grid=grid,
        in_specs=[
            pl.BlockSpec((tb, D), lambda i: (i, 0)),        # x tile, pipelined
            pl.BlockSpec((D, H), lambda i: (0, 0)),         # W1 resident
            pl.BlockSpec((1, H), lambda i: (0, 0)),         # b1 resident
            pl.BlockSpec((1, H), lambda i: (0, 0)),         # w2 (row) resident
            pl.BlockSpec(memory_space=pltpu.MemorySpace.SMEM),  # b2 scalar
        ],
        out_specs=pl.BlockSpec((tb, 1), lambda i: (i, 0)),  # per-row energies
        compiler_params=pltpu.CompilerParams(
            dimension_semantics=("parallel",),              # shards across TCs on v7x
            vmem_limit_bytes=vmem_limit,
        ),
        cost_estimate=pl.CostEstimate(
            flops=2 * B * D * H + 3 * B * H,
            transcendentals=0,
            bytes_accessed=B * D * 4 + D * H * 2 + (2 * H + 1) * 4 + B * 4,
        ),
    )(x, w1_bf, b1_row, w2_row, b2_sc)

    return out


def reference_forward(x, w1, b1, w2, b2):
    # Matches the kernel's numerics: bf16-rounded matmul inputs, f32 accumulation.
    xb = x.astype(jnp.bfloat16).astype(jnp.float32)
    w1b = w1.astype(jnp.bfloat16).astype(jnp.float32)
    h = jnp.maximum(xb @ w1b + jnp.reshape(b1, (1, -1)), 0.0)
    return h @ jnp.reshape(w2, (-1, 1)) + jnp.reshape(b2, (1, 1))


if __name__ == "__main__":
    # Small demo: B=600 with tb=256 exercises a 3-step grid with a ragged last
    # tile (600 = 2*256 + 88); D = H = 128 keeps lane alignment.
    B, D, H = 600, 128, 128

    key = jax.random.PRNGKey(0)
    kx, k1, kb1, k2, kb2 = jax.random.split(key, 5)

    x = jax.random.normal(kx, (B, D), dtype=jnp.float32)
    w1 = jax.random.normal(k1, (D, H), dtype=jnp.float32) * 0.05
    b1 = jax.random.normal(kb1, (1, H), dtype=jnp.float32) * 0.01
    w2 = jax.random.normal(k2, (H, 1), dtype=jnp.float32) * 0.05
    b2 = jax.random.normal(kb2, (1, 1), dtype=jnp.float32) * 0.01

    energy = energy_model_forward(x, w1, b1, w2, b2, tb=256)
    jax.block_until_ready(energy)

    ref = reference_forward(x, w1, b1, w2, b2)
    assert energy.shape == (B, 1)
    assert jnp.allclose(energy, ref, atol=3e-3, rtol=3e-3), (
        float(jnp.max(jnp.abs(energy - ref))))

    # TODO(synk): execution_step (loss / likelihood / stddev metrics) depends on
    # injected loss_fn + GP likelihood objects and autograd; only forward() is
    # implemented as a kernel.

    print("KERNEL_OK")
</pallas_src>

<mosaic_0001>
module attributes {stable_mosaic.version = 11 : i64} {
  func.func @energy_mlp_kernel(%arg0: i32, %arg1: memref<256x128xf32, #tpu.memory_space<vmem>>, %arg2: memref<128x128xbf16, #tpu.memory_space<vmem>>, %arg3: memref<1x128xf32, #tpu.memory_space<vmem>>, %arg4: memref<1x128xf32, #tpu.memory_space<vmem>>, %arg5: memref<1xf32, #tpu.memory_space<smem>>, %arg6: memref<256x1xf32, #tpu.memory_space<vmem>>) attributes {dimension_semantics = [#tpu.dimension_semantics<parallel>], iteration_bounds = array<i64: 3>, scalar_prefetch = 0 : i64, scratch_operands = 0 : i64, tpu.core_type = #tpu.core_type<tc>, window_params = [{transform_indices = @transform_0, window_bounds = array<i64: 256, 128>}, {pipeline_mode = #tpu.pipeline_mode<synchronous>, transform_indices = @transform_1, window_bounds = array<i64: 128, 128>}, {pipeline_mode = #tpu.pipeline_mode<synchronous>, transform_indices = @transform_2, window_bounds = array<i64: 1, 128>}, {pipeline_mode = #tpu.pipeline_mode<synchronous>, transform_indices = @transform_3, window_bounds = array<i64: 1, 128>}, {transform_indices = @transform_4, window_bounds = array<i64: 1>}, {transform_indices = @transform_5, window_bounds = array<i64: 256, 1>}]} {
    %c0 = arith.constant 0 : index
    %c0_0 = arith.constant 0 : index
    %0 = vector.load %arg1[%c0, %c0_0] : memref<256x128xf32, #tpu.memory_space<vmem>>, vector<256x128xf32>
    %1 = arith.truncf %0 : vector<256x128xf32> to vector<256x128xbf16>
    %c0_1 = arith.constant 0 : index
    %c0_2 = arith.constant 0 : index
    %2 = vector.load %arg2[%c0_1, %c0_2] : memref<128x128xbf16, #tpu.memory_space<vmem>>, vector<128x128xbf16>
    %cst = arith.constant dense<0.000000e+00> : vector<256x128xf32>
    %3 = tpu.matmul %1, %2, %cst {dimension_numbers = #tpu.dot_dimension_numbers<[1], [0], [0], [1], [0, 0, 1, 1], [], []>} : vector<256x128xbf16>, vector<128x128xbf16>, vector<256x128xf32> -> vector<256x128xf32>
    %c0_3 = arith.constant 0 : index
    %c0_4 = arith.constant 0 : index
    %4 = vector.load %arg3[%c0_3, %c0_4] : memref<1x128xf32, #tpu.memory_space<vmem>>, vector<1x128xf32>
    %5 = vector.broadcast %4 : vector<1x128xf32> to vector<256x128xf32>
    %6 = arith.addf %3, %5 : vector<256x128xf32>
    %cst_5 = arith.constant 0.000000e+00 : f32
    %7 = vector.broadcast %cst_5 : f32 to vector<256x128xf32>
    %8 = arith.maximumf %6, %7 : vector<256x128xf32>
    %c0_6 = arith.constant 0 : index
    %c0_7 = arith.constant 0 : index
    %9 = vector.load %arg4[%c0_6, %c0_7] : memref<1x128xf32, #tpu.memory_space<vmem>>, vector<1x128xf32>
    %10 = vector.broadcast %9 : vector<1x128xf32> to vector<256x128xf32>
    %11 = arith.mulf %8, %10 : vector<256x128xf32>
    %cst_8 = arith.constant dense<0.000000e+00> : vector<256xf32>
    %12 = vector.multi_reduction <add>, %11, %cst_8 [1] : vector<256x128xf32> to vector<256xf32>
    %13 = vector.shape_cast %12 : vector<256xf32> to vector<256x1xf32>
    %c0_9 = arith.constant 0 : index
    %14 = memref.load %arg5[%c0_9] : memref<1xf32, #tpu.memory_space<smem>>
    %15 = vector.broadcast %14 : f32 to vector<256x1xf32>
    %16 = arith.addf %13, %15 : vector<256x1xf32>
    %c0_10 = arith.constant 0 : index
    %c0_11 = arith.constant 0 : index
    %17 = vector.load %arg6[%c0_10, %c0_11] : memref<256x1xf32, #tpu.memory_space<vmem>>, vector<256x1xf32>
    tpu.vector_store %arg6[%c0_10, %c0_11], %16 {strides = array<i32>} : memref<256x1xf32, #tpu.memory_space<vmem>>, vector<256x1xf32>,
    return
  }
  func.func @transform_0(%arg0: i32) -> (i32, i32) {
    %c0_i32 = arith.constant 0 : i32
    %c0_i32_0 = arith.constant 0 : i32
    return %arg0, %c0_i32 : i32, i32
  }
  func.func @transform_1(%arg0: i32) -> (i32, i32) {
    %c0_i32 = arith.constant 0 : i32
    %c0_i32_0 = arith.constant 0 : i32
    %c0_i32_1 = arith.constant 0 : i32
    return %c0_i32, %c0_i32_0 : i32, i32
  }
  func.func @transform_2(%arg0: i32) -> (i32, i32) {
    %c0_i32 = arith.constant 0 : i32
    %c0_i32_0 = arith.constant 0 : i32
    %c0_i32_1 = arith.constant 0 : i32
    return %c0_i32, %c0_i32_0 : i32, i32
  }
  func.func @transform_3(%arg0: i32) -> (i32, i32) {
    %c0_i32 = arith.constant 0 : i32
    %c0_i32_0 = arith.constant 0 : i32
    %c0_i32_1 = arith.constant 0 : i32
    return %c0_i32, %c0_i32_0 : i32, i32
  }
  func.func @transform_4(%arg0: i32) -> i32 {
    %c0_i32 = arith.constant 0 : i32
    %c0_i32_0 = arith.constant 0 : i32
    return %c0_i32 : i32
  }
  func.func @transform_5(%arg0: i32) -> (i32, i32) {
    %c0_i32 = arith.constant 0 : i32
    %c0_i32_0 = arith.constant 0 : i32
    return %arg0, %c0_i32 : i32, i32
  }
}

</mosaic_0001>

<bundles_post_ra>
// kernel: tpu_custom_call.1
= control target key start
LH: loop header
LB: loop body
LE: loop exit
PB: predicated region body
PF: predicated region fallthrough
CT: control target
= control target key end

     0   :  { %s2060_s0 = inlined_call_operand.hbm [shape: f32[600,128], index: 0, kind: input, shape index: {}]   ;;  %s2061_s1 = inlined_call_operand.hbm [shape: bf16[128,128], index: 1, kind: input, shape index: {}]   ;;  %s2062_s2 = inlined_call_operand.vmem [shape: f32[1,128], index: 2, kind: input, shape index: {}]   ;;  %s2063_s3 = inlined_call_operand.vmem [shape: f32[1,128], index: 3, kind: input, shape index: {}]   ;;  %s2064_s4 = inlined_call_operand.<no memory space> [shape: f32[1], index: 4, kind: input, shape index: {}]   ;;  %s2065_s5 = inlined_call_operand.vmem [shape: f32[600,1], index: 5, kind: output, shape index: {}]  }
   0x1   :  { %10 = sst [smem:[#allocation2]] %s2064_s4 }
   0x2   :  { %11 = vsyncpa [#allocation4], 0 }
   0x3   :  { %13 = vsyncpa [#allocation4 + $0x1], 0 }
   0x4   :  { %14 = vsyncpa [#allocation6], 0  ;;  %s1567_s20 = smov 0   ;;  %s1569_s21 = smov 0  }
   0x5   :  { %s1571_s22 = smov 0   ;;  %s1573_s23 = smov 0  }
   0x6 LB: > { %s1586_s4 = sadd.s32 4294967295, %s1494_s23   ;;  %s1589_s24 = sadd.s32 1, %s1494_s23   ;;  %s1494_s23 = sphi %s1573_s23, %s2088_s23   ;;  %s1490_s22 = sphi %s1571_s22, %s2087_s22   ;;  %s1486_s21 = sphi %s1569_s21, %s2086_s21   ;;  %s1482_s20 = sphi %s1567_s20, %s2085_s20  }
   0x7   : > { %s24_s25 = ssub.s32 %s1494_s23, %s1589_s24  ;;  %s27_s26 = sadd.s32 1, %s1490_s22 }
   0x8   : > { %p25_p0 = scmp.eq.s32.totalorder %s24_s25, 0  ;;  %p34_p1 = scmp.ne.s32.totalorder %s1490_s22, %s1486_s21 }
   0x9   : > { %p35_p2 = scmp.eq.s32.totalorder %s1494_s23, 0  ;;  %p40_p3 = scmp.ne.s32.totalorder %s1486_s21, %s1482_s20 }
   0xa   : > { %s1599_s27 = scalar_select %p25_p0, %s1490_s22, %s27_s26  }
   0xb   : > { %p1601_p4 = por %p35_p2, %p34_p1  ;;  %p2066_p5 = scmp.eq.s32.totalorder %s1586_s4, 0 }
   0xc   : > { %p148_p6 = scmp.eq.s32.totalorder %s1586_s4, 2  ;;  %p1115_p7 = scmp.ge.s32.totalorder %s1494_s23, 1 }
   0xd   : > { %s2069_s28 = scalar_select %p1601_p4, 1, 0 }
   0xe   : > { %p1610_p8 = por %p2066_p5, %p40_p3  ;;  %p161_p9 = scmp.lt.s32.totalorder %s1494_s23, 4 }
   0xf   : > { %p1615_p10 = por %p148_p6, %p34_p1  ;;  %s1528_s7 = smov [#allocation5]  }
  0x10   : > { %s2070_s29 = scalar_select %p1610_p8, 1, 0 }
  0x11   : > { %s2071_s30 = scalar_select %p1615_p10, 1, 0 }
  0x12   : > { %p1619_p11 = pnand %p1115_p7, %p161_p9  ;;  %s173_s8 = sshll.u32 %s1528_s7, 4  ;;  %s174_s8 = int_to_ptr.vmem [resolvable:$true] %s173_s8 }
  0x13   : > { %s1368_s12 = scalar_lea.hbm %s2061_s1, 1024 }
  0x14   : > { %s2072_s6 = scalar_select %p1619_p11, 1, 0 }
  0x15   : > { %p1253_p12 = pneg %p1619_p11  ;;  %p1369_p0 = scmp.ne.s32.totalorder %s2061_s1, %s1368_s12 }
  0x16   : > { %p1375_p6 = scmp.lt.u32.totalorder %s1368_s12, %s2061_s1 }
  0x17   : > { %p1627_p13 = pnand %p1253_p12, %p2066_p5 }
  0x19   : > { %p1370_p1 = pneg %p1627_p13 }
  0x1b   : > { %p1371_p2 = pnand %p1370_p1, %p1369_p0 }
  0x1d   : > { %p1372_p3 = pneg %p1371_p2 }
  0x1f   : > { %p1377_p7 = pnand %p1375_p6, %p1372_p3 }
  0x21   : > { %1380 = shalt.err (!%p1377_p7)
}
  0x22   : > { %s1381_s17 = scalar_lea.vmem %s174_s8, 1024  ;;  %p1389_p10 = scmp.lt.s32.totalorder %s174_s8, %s174_s8 }
  0x23   : > { %p1382_p9 = scmp.ne.s32.totalorder %s174_s8, %s1381_s17  ;;  %p1390_p8 = scmp.lt.s32.totalorder %s1381_s17, %s1381_s17 }
  0x25   : > { %p1384_p12 = pnand %p1382_p9, %p1370_p1  ;;  %p1391_p11 = por %p1390_p8, %p1389_p10 }
  0x27   : > { %p1385_p5 = pneg %p1384_p12 }
  0x29   : > { %p1392_p4 = pnand %p1391_p11, %p1385_p5 }
  0x2b   : > { %1395 = shalt.err (!%p1392_p4)
}
  0x2c   : > { %s1529_s18 = smov 64   ;;  %s1530_s19 = smov 4  }
  0x2d   : > { %1256 = dma.hbm_to_vmem [thread:$0]  (!%p1627_p13), %s2061_s1, 1024, %s174_s8, [#allocation6], %s1529_s18, %s1529_s18, %s1530_s19  }
  0x2e   : > { %p1117_p0 = scmp.ge.s32.totalorder %s1494_s23, 3 }
  0x2f   : > { %p2074_p2 = scmp.ne.s32.totalorder (!%p1117_p0), %s2069_s28, 0 }
  0x30   : > { %192 = sbr.rel (%p1117_p0) target bundleno = 90 (0x5a), region = 32 }
  0x37   : > { %195 = sbr.rel (!%p2074_p2) target bundleno = 90 (0x5a), region = 36  ;;  %s196_s26 = sand.u32 (%p2074_p2), 1, %s1490_s22  }
  0x38   : > { %s1119_s7 = sshll.u32 (%p2074_p2), %s1494_s23, 5  ;;  %s1118_s10 = sshll.u32 (%p2074_p2), %s196_s26, 8 }
  0x39   : > { %s202_s11 = ssub.s32 (%p2074_p2), 75, %s1119_s7  ;;  %s1655_s13 = scalar_lea.sflag (%p2074_p2), [#allocation4], %s196_s26 }
  0x3a   : > { %p203_p4 = scmp.lt.s32.totalorder (%p2074_p2), %s202_s11, 32  ;;  %s200_s8 = scalar_lea.vmem (%p2074_p2), [#allocation3], %s1118_s10 }
  0x3e   : > { %s2090_s11 = smov (!%p203_p4, %s202_s11), 32 }
  0x3f   : > { %s1652_s12 = sshll.u32 %s2090_s11, 7 }
  0x40   : > { %s207_s9 = ssub.s32 4096, %s1652_s12 }
  0x41   : > { %208 = vsyncadd %s1655_s13, %s207_s9  ;;  %p1121_p5 = scmp.ne.s32.totalorder %s1652_s12, 0  ;;  %s1156_s28 = sshll.u32 %s1494_s23, 12 }
  0x42   : > { %s1663_s16 = scalar_lea.hbm %s2060_s0, %s1156_s28  ;;  %s213_s17 = sshll.u32 %s200_s8, 4  ;;  %s1665_s17 = int_to_ptr.vmem [resolvable:$true] %s213_s17 }
  0x43   : > { %s1396_s18 = scalar_lea.hbm %s1663_s16, %s1652_s12  ;;  %s1400_s23 = scalar_lea.hbm %s2060_s0, 9600 }
  0x44   : > { %p1397_p8 = scmp.ne.s32.totalorder %s1663_s16, %s1396_s18  ;;  %p1401_p13 = scmp.lt.u32.totalorder %s1663_s16, %s2060_s0 }
  0x45   : > { %p1402_p1 = scmp.lt.u32.totalorder %s1400_s23, %s1396_s18  ;;  %p1404_p6 = scmp.lt.u32.totalorder %s1396_s18, %s1663_s16 }
  0x46   : > { %p1398_p10 = pnand %p1397_p8, %p1121_p5 }
  0x47   : > { %p1403_p3 = por %p1402_p1, %p1401_p13 }
  0x48   : > { %p1399_p11 = pneg %p1398_p10 }
  0x49   : > { %p1405_p7 = por %p1404_p6, %p1403_p3 }
  0x4b   : > { %p1406_p9 = pnand %p1405_p7, %p1399_p11 }
  0x4d   : > { %1409 = shalt.err (!%p1406_p9)
}
  0x4e   : > { %s1410_s7 = scalar_lea.vmem %s1665_s17, %s1652_s12  ;;  %s1531_s10 = smov [#allocation3]  }
  0x4f   : > { %p1411_p12 = scmp.ne.s32.totalorder %s1665_s17, %s1410_s7  ;;  %s1414_s11 = sshll.u32 %s1531_s10, 4  ;;  %s1415_s11 = int_to_ptr.vmem [resolvable:$false] %s1414_s11 }
  0x50   : > { %s1416_s9 = scalar_lea.vmem %s1415_s11, 8192  ;;  %p1417_p4 = scmp.lt.s32.totalorder %s1665_s17, %s1415_s11 }
  0x51   : > { %p1412_p0 = pnand %p1411_p12, %p1121_p5  ;;  %p1418_p8 = scmp.lt.s32.totalorder %s1416_s9, %s1410_s7 }
  0x53   : > { %p1413_p2 = pneg %p1412_p0  ;;  %p1419_p10 = por %p1418_p8, %p1417_p4 }
  0x55   : > { %p1420_p13 = pnand %p1419_p10, %p1413_p2 }
  0x57   : > { %1423 = shalt.err (!%p1420_p13)
}
  0x58   : > { %s1532_s8 = smov 128   ;;  %s1533_s28 = smov 8  }
  0x59   : > { %219 = dma.hbm_to_vmem [thread:$0]  (%p1121_p5), %s1663_s16, %s1652_s12, %s1665_s17, %s1655_s13, %s1532_s8, %s1532_s8, %s1533_s28  }
  0x5a PF: > { %p2075_p11 = scmp.ne.s32.totalorder %s2072_s6, 0 }
  0x5b   : > { %s227_s14 = sand.u32 (!%p2075_p11), 1, %s1486_s21   ;;  %p2076_p1 = scmp.ne.s32.totalorder (!%p2075_p11), %s2070_s29, 0 }
  0x5c   : > { %225 = sbr.rel (%p2075_p11) target bundleno = 615 (0x267), region = 40  ;;  %s1695_s15 = sshll.u32 (!%p2075_p11), %s227_s14, 8 }
  0x5d   : > { %s228_s18 = scalar_lea.sflag (!%p2075_p11), [#allocation4], %s227_s14  ;;  %s1698_s19 = scalar_lea.vmem (!%p2075_p11), [#allocation3], %s1695_s15 }
  0x63   : > { %1473 = dma.done.wait (%p2076_p1), %s228_s18, 4096  }
  0x64   : > { %1475 = vsyncadd (%p2076_p1), %s228_s18, 4294963200  ;;  %p2077_p5 = scmp.eq.s32.totalorder %s1586_s4, 0 }
  0x66   : > { %1477 = dma.done.wait (%p2077_p5), [#allocation6], 1024   ;;  %p2078_p3 = pmov %p2077_p5 }
  0x67   : > { %v1360_v0 = vld [vmem:[#allocation5] sm:$0xff]   ;;  %v1361_v1 = vld [vmem:[#allocation5 + $0x8] sm:$0xff]   ;;  %v1362_v2 = vld [vmem:[#allocation5 + $0x10] sm:$0xff]   ;;  %s687_s16 = sld [smem:[#allocation2]]  ;;  %vm721_vm0 = vcmask 7168   ;;  %s1822_s17 = scalar_lea.vmem [#allocation7], %s1695_s15  }
  0x68   : > { %1479 = vsyncadd (%p2078_p3), [#allocation6], 4294966272  ;;  %1184 = vmatprep.subr.bf16.mxu0 %v1360_v0  ;;  %1232 = vmatprep.subr.bf16.mxu1 %v1360_v0  ;;  %v1363_v3 = vld [vmem:[#allocation5 + $0x18] sm:$0xff]   ;;  %v272_v4 = vld [vmem:[%s1698_s19] sm:$0xff]  ;;  %p2079_p6 = scmp.ne.s32.totalorder %s2071_s30, 0 }
  0x69   : > { %1185 = vmatpush3.bf16.msra.mxu0 %v1360_v0  ;;  %1240 = vmatpush3.bf16.msra.mxu1 %v1360_v0  ;;  %v273_v5 = vld [vmem:[%s1698_s19 + $0x8] sm:$0xff]  ;;  %v288_v6 = vld [vmem:[%s1698_s19 + $0x80] sm:$0xff]  ;;  %v1366_v12 = vld [vmem:[#allocation5 + $0x30] sm:$0xff]   ;;  %s1140_s20 = sshll.u32 (%p2079_p6), %s1586_s4, 5  ;;  %s1157_s23 = sshll.u32 (%p2079_p6), %s1586_s4, 8 }
  0x6a   : > { %1186 = vmatprep.subr.bf16.mxu0 %v1361_v1  ;;  %1233 = vmatprep.subr.bf16.mxu1 %v1361_v1  ;;  %v304_v7 = vpack.c.bf16 %v273_v5, %v272_v4  ;;  %v289_v8 = vld [vmem:[%s1698_s19 + $0x88] sm:$0xff]  ;;  %v1364_v10 = vld [vmem:[#allocation5 + $0x20] sm:$0xff]   ;;  %v1367_v13 = vld [vmem:[#allocation5 + $0x38] sm:$0xff]   ;;  %s762_s25 = ssub.s32 (%p2079_p6), 75, %s1140_s20  ;;  %s1925_s10 = scalar_lea.vmem (%p2079_p6), %s2065_s5, %s1157_s23  }
  0x6b   : > { %v312_v9 = vpack.c.bf16 %v289_v8, %v288_v6  ;;  %v1365_v11 = vld [vmem:[#allocation5 + $0x28] sm:$0xff]   ;;  %v274_v14 = vld [vmem:[%s1698_s19 + $0x10] sm:$0xff]  ;;  %v275_v15 = vld [vmem:[%s1698_s19 + $0x18] sm:$0xff]  ;;  %p763_p7 = scmp.lt.s32.totalorder (%p2079_p6), %s762_s25, 32 }
  0x6c   : > { %1200 = vmatprep.mubr.bf16.mxu0 %v304_v7  ;;  %v290_v16 = vld [vmem:[%s1698_s19 + $0x90] sm:$0xff]  ;;  %v291_v17 = vld [vmem:[%s1698_s19 + $0x98] sm:$0xff]  ;;  %v276_v18 = vld [vmem:[%s1698_s19 + $0x20] sm:$0xff]  ;;  %v305_v22 = vpack.c.bf16 %v275_v15, %v274_v14 }
  0x6d   : > { %1187 = vmatpush3.bf16.msra.mxu0 %v1361_v1  ;;  %1241 = vmatpush3.bf16.msra.mxu1 %v1361_v1  ;;  %v277_v19 = vld [vmem:[%s1698_s19 + $0x28] sm:$0xff]  ;;  %v292_v20 = vld [vmem:[%s1698_s19 + $0xa0] sm:$0xff]  ;;  %v313_v23 = vpack.c.bf16 %v291_v17, %v290_v16  ;;  %v278_v26 = vld [vmem:[%s1698_s19 + $0x30] sm:$0xff] }
  0x6e   : > { %1188 = vmatprep.subr.bf16.mxu0 %v1362_v2  ;;  %1234 = vmatprep.subr.bf16.mxu1 %v1362_v2  ;;  %v293_v21 = vld [vmem:[%s1698_s19 + $0xa8] sm:$0xff]  ;;  %v306_v24 = vpack.c.bf16 %v277_v19, %v276_v18  ;;  %v279_v27 = vld [vmem:[%s1698_s19 + $0x38] sm:$0xff]  ;;  %v294_v28 = vld [vmem:[%s1698_s19 + $0xb0] sm:$0xff] }
  0x6f   : > { %1216 = vmatprep.mubr.bf16.mxu1 %v312_v9  ;;  %v314_v25 = vpack.c.bf16 %v293_v21, %v292_v20  ;;  %v295_v29 = vld [vmem:[%s1698_s19 + $0xb8] sm:$0xff]  ;;  %v280_v30 = vld [vmem:[%s1698_s19 + $0x40] sm:$0xff]  ;;  %v281_v31 = vld [vmem:[%s1698_s19 + $0x48] sm:$0xff]  ;;  %v307_v34 = vpack.c.bf16 %v279_v27, %v278_v26 }
  0x70   : > { %v296_v32 = vld [vmem:[%s1698_s19 + $0xc0] sm:$0xff]  ;;  %v297_v33 = vld [vmem:[%s1698_s19 + $0xc8] sm:$0xff]  ;;  %v315_v35 = vpack.c.bf16 %v295_v29, %v294_v28  ;;  %v308_v36 = vpack.c.bf16 %v281_v31, %v280_v30  ;;  %v282_v38 = vld [vmem:[%s1698_s19 + $0x50] sm:$0xff] }
  0x71   : > { %1189 = vmatpush3.bf16.msra.mxu0 %v1362_v2  ;;  %1242 = vmatpush3.bf16.msra.mxu1 %v1362_v2  ;;  %v316_v37 = vpack.c.bf16 %v297_v33, %v296_v32  ;;  %v283_v39 = vld [vmem:[%s1698_s19 + $0x58] sm:$0xff]  ;;  %v298_v40 = vld [vmem:[%s1698_s19 + $0xd0] sm:$0xff]  ;;  %v284_v42 = vld [vmem:[%s1698_s19 + $0x60] sm:$0xff] }
  0x72   : > { %1190 = vmatprep.subr.bf16.mxu0 %v1363_v3  ;;  %1235 = vmatprep.subr.bf16.mxu1 %v1363_v3  ;;  %v299_v41 = vld [vmem:[%s1698_s19 + $0xd8] sm:$0xff]  ;;  %v285_v43 = vld [vmem:[%s1698_s19 + $0x68] sm:$0xff]  ;;  %v300_v44 = vld [vmem:[%s1698_s19 + $0xe0] sm:$0xff]  ;;  %v309_v46 = vpack.c.bf16 %v283_v39, %v282_v38 }
  0x73   : > { %v301_v45 = vld [vmem:[%s1698_s19 + $0xe8] sm:$0xff]  ;;  %v317_v47 = vpack.c.bf16 %v299_v41, %v298_v40  ;;  %v310_v48 = vpack.c.bf16 %v285_v43, %v284_v42  ;;  %v286_v50 = vld [vmem:[%s1698_s19 + $0x70] sm:$0xff]  ;;  %v287_v51 = vld [vmem:[%s1698_s19 + $0x78] sm:$0xff] }
  0x74   : > { %v318_v49 = vpack.c.bf16 %v301_v45, %v300_v44  ;;  %v302_v52 = vld [vmem:[%s1698_s19 + $0xf0] sm:$0xff]  ;;  %v303_v53 = vld [vmem:[%s1698_s19 + $0xf8] sm:$0xff]  ;;  %v311_v54 = vpack.c.bf16 %v287_v51, %v286_v50  ;;  %v1743_v56 = vld [vmem:[%s2062_s2] ss:$0 sm:$0xff] }
  0x75   : > { %1191 = vmatpush3.bf16.msra.mxu0 %v1363_v3  ;;  %1243 = vmatpush3.bf16.msra.mxu1 %v1363_v3  ;;  %v319_v55 = vpack.c.bf16 %v303_v53, %v302_v52  ;;  %v1751_v2 = vld [vmem:[%s2063_s3] ss:$0 sm:$0xff] }
  0x76   : > { %1192 = vmatprep.subr.bf16.mxu0 %v1364_v10  ;;  %1236 = vmatprep.subr.bf16.mxu1 %v1364_v10 }
  0x79   : > { %1193 = vmatpush3.bf16.msra.mxu0 %v1364_v10  ;;  %1244 = vmatpush3.bf16.msra.mxu1 %v1364_v10 }
  0x7a   : > { %1194 = vmatprep.subr.bf16.mxu0 %v1365_v11  ;;  %1237 = vmatprep.subr.bf16.mxu1 %v1365_v11 }
  0x7d   : > { %1195 = vmatpush3.bf16.msra.mxu0 %v1365_v11  ;;  %1245 = vmatpush3.bf16.msra.mxu1 %v1365_v11 }
  0x7e   : > { %1196 = vmatprep.subr.bf16.mxu0 %v1366_v12  ;;  %1238 = vmatprep.subr.bf16.mxu1 %v1366_v12 }
  0x81   : > { %1197 = vmatpush3.bf16.msra.mxu0 %v1366_v12  ;;  %1246 = vmatpush3.bf16.msra.mxu1 %v1366_v12 }
  0x82   : > { %1198 = vmatprep.subr.bf16.mxu0 %v1367_v13  ;;  %1239 = vmatprep.subr.bf16.mxu1 %v1367_v13 }
  0x85   : > { %1199 = vmatpush3.bf16.msra.mxu0 %v1367_v13  ;;  %1247 = vmatpush3.bf16.msra.mxu1 %v1367_v13 }
  0x88   : > { %1201 = vmatmul.mubr.bf16.vlgmr.msra.gmra.mrb[0].mxu0 %v305_v22  ;;  %1217 = vmatmul.mubr.bf16.vlgmr.msra.gmra.mrb[0].mxu1 %v313_v23 }
  0x89   : > { %1204 = vmatprep.mubr.bf16.mxu0 %v306_v24  ;;  %1220 = vmatprep.mubr.bf16.mxu1 %v314_v25 }
  0x90   : > { %1205 = vmatmul.mubr.bf16.gmra.mrb[4].mxu0 %v307_v34  ;;  %1221 = vmatmul.mubr.bf16.gmra.mrb[4].mxu1 %v315_v35 }
  0x91   : > { %1208 = vmatprep.mubr.bf16.mxu0 %v308_v36  ;;  %1224 = vmatprep.mubr.bf16.mxu1 %v316_v37 }
  0x98   : > { %1209 = vmatmul.mubr.bf16.gmra.mrb[8].mxu0 %v309_v46  ;;  %1225 = vmatmul.mubr.bf16.gmra.mrb[8].mxu1 %v317_v47 }
  0x99   : > { %1212 = vmatprep.mubr.bf16.mxu0 %v310_v48  ;;  %1228 = vmatprep.mubr.bf16.mxu1 %v318_v49 }
  0xa0   : > { %1213 = vmatmul.mubr.bf16.gmra.mrb[12].mxu0 %v311_v54  ;;  %1229 = vmatmul.mubr.bf16.gmra.mrb[12].mxu1 %v319_v55 }
 0x15b   : > { %v1202_v57 = vpop.f32.mrb[0].mxu0  ;;  %v1218_v58 = vpop.f32.mrb[0].mxu1 }
 0x15c   : > { %v434_v59 = vadd.f32 %v1202_v57, %v1743_v56  ;;  %v498_v60 = vadd.f32 %v1218_v58, %v1743_v56  ;;  %v425_v61 = vpop.f32.mrb[1].mxu0  ;;  %v489_v62 = vpop.f32.mrb[1].mxu1 }
 0x15d   : > { %v426_v63 = vadd.f32 %v1743_v56, %v425_v61  ;;  %v1203_v0 = vpop.f32.mrb[2].mxu0  ;;  %v1219_v1 = vpop.f32.mrb[2].mxu1  ;;  %v490_v8 = vadd.f32 %v1743_v56, %v489_v62 }
 0x15e   : > { %v554_v3 = vmax.f32 %v434_v59, 0.0  ;;  %v570_v4 = vmax.f32 %v498_v60, 0.0  ;;  %v437_v5 = vadd.f32 %v1203_v0, %v1743_v56  ;;  %v428_v6 = vpop.f32.mrb[3].mxu0  ;;  %v492_v7 = vpop.f32.mrb[3].mxu1  ;;  %v501_v9 = vadd.f32 %v1219_v1, %v1743_v56 }
 0x15f   : > { %v552_v10 = vmax.f32 %v426_v63, 0.0  ;;  %v429_v14 = vadd.f32 %v1743_v56, %v428_v6  ;;  %v493_v15 = vadd.f32 %v1743_v56, %v492_v7  ;;  %v568_v18 = vmax.f32 %v490_v8, 0.0 }
 0x160   : > { %v555_v11 = vmax.f32 %v437_v5, 0.0  ;;  %v609_v12 = vmul.f32 %v1751_v2, %v570_v4  ;;  %v593_v13 = vmul.f32 %v1751_v2, %v554_v3  ;;  %v571_v19 = vmax.f32 %v501_v9, 0.0 }
 0x161   : > { %v591_v21 = vmul.f32 %v1751_v2, %v552_v10  ;;  %v553_v28 = vmax.f32 %v429_v14, 0.0  ;;  %v569_v29 = vmax.f32 %v493_v15, 0.0  ;;  %v607_v33 = vmul.f32 %v1751_v2, %v568_v18 }
 0x162   : > { %659 = vadd.xlane.f32.xlu0 %v609_v12  ;;  %627 = vadd.xlane.f32.xlu1 %v593_v13  ;;  %v594_v20 = vmul.f32 %v1751_v2, %v555_v11  ;;  %v610_v32 = vmul.f32 %v1751_v2, %v571_v19 }
 0x163   : > { %v1206_v16 = vpop.f32.mrb[4].mxu0  ;;  %v1222_v17 = vpop.f32.mrb[4].mxu1  ;;  %v608_v35 = vmul.f32 %v1751_v2, %v569_v29  ;;  %v592_v41 = vmul.f32 %v1751_v2, %v553_v28 }
 0x164   : > { %v441_v22 = vpop.f32.mrb[5].mxu0  ;;  %v505_v23 = vpop.f32.mrb[5].mxu1  ;;  %v450_v30 = vadd.f32 %v1206_v16, %v1743_v56  ;;  %v514_v34 = vadd.f32 %v1222_v17, %v1743_v56 }
 0x165   : > { %v1207_v24 = vpop.f32.mrb[6].mxu0  ;;  %v1223_v25 = vpop.f32.mrb[6].mxu1  ;;  %v442_v48 = vadd.f32 %v1743_v56, %v441_v22  ;;  %v506_v54 = vadd.f32 %v1743_v56, %v505_v23 }
 0x166   : > { %629 = vadd.xlane.f32.xlu1 %v594_v20  ;;  %623 = vadd.xlane.f32.xlu0 %v591_v21  ;;  %v444_v26 = vpop.f32.mrb[7].mxu0  ;;  %v508_v27 = vpop.f32.mrb[7].mxu1  ;;  %v453_v31 = vadd.f32 %v1207_v24, %v1743_v56  ;;  %v558_v38 = vmax.f32 %v450_v30, 0.0  ;;  %v517_v40 = vadd.f32 %v1223_v25, %v1743_v56  ;;  %v574_v49 = vmax.f32 %v514_v34, 0.0 }
 0x167   : > { %v445_v50 = vadd.f32 %v1743_v56, %v444_v26  ;;  %v509_v55 = vadd.f32 %v1743_v56, %v508_v27  ;;  %v556_v59 = vmax.f32 %v442_v48, 0.0  ;;  %v572_v6 = vmax.f32 %v506_v54, 0.0 }
 0x168   : > { %v559_v39 = vmax.f32 %v453_v31, 0.0  ;;  %v575_v51 = vmax.f32 %v517_v40, 0.0  ;;  %v597_v53 = vmul.f32 %v1751_v2, %v558_v38  ;;  %v613_v62 = vmul.f32 %v1751_v2, %v574_v49 }
 0x169   : > { %v557_v60 = vmax.f32 %v445_v50, 0.0  ;;  %v573_v7 = vmax.f32 %v509_v55, 0.0  ;;  %v595_v11 = vmul.f32 %v1751_v2, %v556_v59  ;;  %v611_v13 = vmul.f32 %v1751_v2, %v572_v6 }
 0x16a   : > { %661 = vadd.xlane.f32.xlu1 %v610_v32  ;;  %655 = vadd.xlane.f32.xlu0 %v607_v33  ;;  %v598_v52 = vmul.f32 %v1751_v2, %v559_v39  ;;  %v614_v61 = vmul.f32 %v1751_v2, %v575_v51 }
 0x16b   : > { %v1210_v36 = vpop.f32.mrb[8].mxu0  ;;  %v1226_v37 = vpop.f32.mrb[8].mxu1  ;;  %v596_v10 = vmul.f32 %v1751_v2, %v557_v60  ;;  %v612_v17 = vmul.f32 %v1751_v2, %v573_v7  ;;  %v1817_v60 = vstv %s687_s16 }
 0x16c   : > { %v457_v42 = vpop.f32.mrb[9].mxu0  ;;  %v521_v43 = vpop.f32.mrb[9].mxu1  ;;  %v466_v8 = vadd.f32 %v1210_v36, %v1743_v56  ;;  %v530_v12 = vadd.f32 %v1226_v37, %v1743_v56 }
 0x16d   : > { %v1211_v44 = vpop.f32.mrb[10].mxu0  ;;  %v1227_v45 = vpop.f32.mrb[10].mxu1  ;;  %v458_v18 = vadd.f32 %v1743_v56, %v457_v42  ;;  %v522_v24 = vadd.f32 %v1743_v56, %v521_v43 }
 0x16e   : > { %657 = vadd.xlane.f32.xlu1 %v608_v35  ;;  %625 = vadd.xlane.f32.xlu0 %v592_v41  ;;  %v460_v46 = vpop.f32.mrb[11].mxu0  ;;  %v524_v47 = vpop.f32.mrb[11].mxu1  ;;  %v469_v9 = vadd.f32 %v1211_v44, %v1743_v56  ;;  %v562_v14 = vmax.f32 %v466_v8, 0.0  ;;  %v533_v16 = vadd.f32 %v1227_v45, %v1743_v56  ;;  %v578_v19 = vmax.f32 %v530_v12, 0.0 }
 0x16f   : > { %v461_v20 = vadd.f32 %v1743_v56, %v460_v46  ;;  %v525_v25 = vadd.f32 %v1743_v56, %v524_v47  ;;  %v560_v26 = vmax.f32 %v458_v18, 0.0  ;;  %v576_v30 = vmax.f32 %v522_v24, 0.0 }
 0x170   : > { %v563_v15 = vmax.f32 %v469_v9, 0.0  ;;  %v579_v21 = vmax.f32 %v533_v16, 0.0  ;;  %v601_v23 = vmul.f32 %v1751_v2, %v562_v14  ;;  %v617_v29 = vmul.f32 %v1751_v2, %v578_v19 }
 0x171   : > { %v561_v27 = vmax.f32 %v461_v20, 0.0  ;;  %v577_v31 = vmax.f32 %v525_v25, 0.0  ;;  %v599_v35 = vmul.f32 %v1751_v2, %v560_v26  ;;  %v615_v37 = vmul.f32 %v1751_v2, %v576_v30 }
 0x172   : > { %637 = vadd.xlane.f32.xlu1 %v598_v52  ;;  %635 = vadd.xlane.f32.xlu0 %v597_v53  ;;  %v602_v22 = vmul.f32 %v1751_v2, %v563_v15  ;;  %v618_v28 = vmul.f32 %v1751_v2, %v579_v21 }
 0x173   : > { %v1214_v57 = vpop.f32.mrb[12].mxu0  ;;  %v1776_v58 = vpop.f32.mrb[12].mxu1  ;;  %v600_v34 = vmul.f32 %v1751_v2, %v561_v27  ;;  %v616_v41 = vmul.f32 %v1751_v2, %v577_v31 }
 0x174   : > { %v473_v63 = vpop.f32.mrb[13].mxu0  ;;  %v537_v0 = vpop.f32.mrb[13].mxu1  ;;  %v482_v32 = vadd.f32 %v1214_v57, %v1743_v56  ;;  %v546_v48 = vadd.f32 %v1776_v58, %v1743_v56 }
 0x175   : > { %v1215_v1 = vpop.f32.mrb[14].mxu0  ;;  %v1231_v3 = vpop.f32.mrb[14].mxu1  ;;  %v474_v36 = vadd.f32 %v1743_v56, %v473_v63  ;;  %v538_v43 = vadd.f32 %v1743_v56, %v537_v0 }
 0x176   : > { %669 = vadd.xlane.f32.xlu1 %v614_v61  ;;  %667 = vadd.xlane.f32.xlu0 %v613_v62  ;;  %v476_v4 = vpop.f32.mrb[15].mxu0  ;;  %v540_v5 = vpop.f32.mrb[15].mxu1  ;;  %v485_v33 = vadd.f32 %v1215_v1, %v1743_v56  ;;  %v566_v38 = vmax.f32 %v482_v32, 0.0  ;;  %v549_v49 = vadd.f32 %v1231_v3, %v1743_v56  ;;  %v582_v54 = vmax.f32 %v546_v48, 0.0 }
 0x177   : > { %v477_v40 = vadd.f32 %v1743_v56, %v476_v4  ;;  %v564_v42 = vmax.f32 %v474_v36, 0.0  ;;  %v541_v45 = vadd.f32 %v1743_v56, %v540_v5  ;;  %v580_v50 = vmax.f32 %v538_v43, 0.0 }
 0x178   : > { %v567_v39 = vmax.f32 %v485_v33, 0.0  ;;  %v605_v47 = vmul.f32 %v1751_v2, %v566_v38  ;;  %v583_v55 = vmax.f32 %v549_v49, 0.0  ;;  %v621_v56 = vmul.f32 %v1751_v2, %v582_v54 }
 0x179   : > { %v565_v44 = vmax.f32 %v477_v40, 0.0  ;;  %v581_v51 = vmax.f32 %v541_v45, 0.0  ;;  %v603_v53 = vmul.f32 %v1751_v2, %v564_v42  ;;  %v619_v59 = vmul.f32 %v1751_v2, %v580_v50 }
 0x17a   : > { %633 = vadd.xlane.f32.xlu1 %v596_v10  ;;  %631 = vadd.xlane.f32.xlu0 %v595_v11  ;;  %v606_v46 = vmul.f32 %v1751_v2, %v567_v39  ;;  %v622_v58 = vmul.f32 %v1751_v2, %v583_v55 }
 0x17b   : > { %v604_v52 = vmul.f32 %v1751_v2, %v565_v44  ;;  %v620_v57 = vmul.f32 %v1751_v2, %v581_v51 }
 0x17e   : > { %665 = vadd.xlane.f32.xlu1 %v612_v17  ;;  %663 = vadd.xlane.f32.xlu0 %v611_v13 }
 0x182   : > { %645 = vadd.xlane.f32.xlu1 %v602_v22  ;;  %643 = vadd.xlane.f32.xlu0 %v601_v23 }
 0x186   : > { %677 = vadd.xlane.f32.xlu1 %v618_v28  ;;  %675 = vadd.xlane.f32.xlu0 %v617_v29 }
 0x18a   : > { %641 = vadd.xlane.f32.xlu1 %v600_v34  ;;  %639 = vadd.xlane.f32.xlu0 %v599_v35 }
 0x18e   : > { %673 = vadd.xlane.f32.xlu1 %v616_v41  ;;  %671 = vadd.xlane.f32.xlu0 %v615_v37 }
 0x192   : > { %653 = vadd.xlane.f32.xlu1 %v606_v46  ;;  %651 = vadd.xlane.f32.xlu0 %v605_v47 }
 0x196   : > { %649 = vadd.xlane.f32.xlu1 %v604_v52  ;;  %647 = vadd.xlane.f32.xlu0 %v603_v53 }
 0x19a   : > { %681 = vadd.xlane.f32.xlu1 %v620_v57  ;;  %679 = vadd.xlane.f32.xlu0 %v619_v59 }
 0x19e   : > { %685 = vadd.xlane.f32.xlu1 %v622_v58  ;;  %683 = vadd.xlane.f32.xlu0 %v621_v56 }
 0x1ef   : > { %v660_v61 = vpop.xlane.xlu0 %659  ;;  %v628_v62 = vpop.xlane.xlu1 %627 }
 0x1f0   : > { %v707_v63 = vadd.f32 %v1817_v60, %v660_v61  ;;  %v691_v0 = vadd.f32 %v1817_v60, %v628_v62 }
 0x1f2   : > { %740 = vst.msk [vmem:[%s1822_s17 + $0x90] sm:$0xff] %vm721_vm0, %v707_v63  ;;  %724 = vst.msk [vmem:[%s1822_s17 + $0x10] sm:$0xff] %vm721_vm0, %v691_v0 }
 0x1f3   : > { %v630_v2 = vpop.xlane.xlu1 %629  ;;  %v624_v1 = vpop.xlane.xlu0 %623 }
 0x1f4   : > { %v692_v3 = vadd.f32 %v1817_v60, %v630_v2  ;;  %v689_v4 = vadd.f32 %v1817_v60, %v624_v1 }
 0x1f6   : > { %725 = vst.msk [vmem:[%s1822_s17 + $0x18] sm:$0xff] %vm721_vm0, %v692_v3  ;;  %722 = vst.msk [vmem:[%s1822_s17] sm:$0xff] %vm721_vm0, %v689_v4 }
 0x1f7   : > { %v662_v5 = vpop.xlane.xlu1 %661  ;;  %v656_v6 = vpop.xlane.xlu0 %655 }
 0x1f8   : > { %v708_v7 = vadd.f32 %v1817_v60, %v662_v5  ;;  %v705_v8 = vadd.f32 %v1817_v60, %v656_v6 }
 0x1fa   : > { %741 = vst.msk [vmem:[%s1822_s17 + $0x98] sm:$0xff] %vm721_vm0, %v708_v7  ;;  %738 = vst.msk [vmem:[%s1822_s17 + $0x80] sm:$0xff] %vm721_vm0, %v705_v8 }
 0x1fb   : > { %v658_v9 = vpop.xlane.xlu1 %657  ;;  %v626_v10 = vpop.xlane.xlu0 %625 }
 0x1fc   : > { %v706_v11 = vadd.f32 %v1817_v60, %v658_v9  ;;  %v690_v12 = vadd.f32 %v1817_v60, %v626_v10 }
 0x1fe   : > { %739 = vst.msk [vmem:[%s1822_s17 + $0x88] sm:$0xff] %vm721_vm0, %v706_v11  ;;  %723 = vst.msk [vmem:[%s1822_s17 + $0x8] sm:$0xff] %vm721_vm0, %v690_v12 }
 0x1ff   : > { %v638_v13 = vpop.xlane.xlu1 %637  ;;  %v636_v14 = vpop.xlane.xlu0 %635 }
 0x200   : > { %v696_v15 = vadd.f32 %v1817_v60, %v638_v13  ;;  %v695_v16 = vadd.f32 %v1817_v60, %v636_v14 }
 0x202   : > { %729 = vst.msk [vmem:[%s1822_s17 + $0x38] sm:$0xff] %vm721_vm0, %v696_v15  ;;  %728 = vst.msk [vmem:[%s1822_s17 + $0x30] sm:$0xff] %vm721_vm0, %v695_v16 }
 0x203   : > { %v670_v17 = vpop.xlane.xlu1 %669  ;;  %v668_v18 = vpop.xlane.xlu0 %667 }
 0x204   : > { %v712_v19 = vadd.f32 %v1817_v60, %v670_v17  ;;  %v711_v20 = vadd.f32 %v1817_v60, %v668_v18 }
 0x206   : > { %745 = vst.msk [vmem:[%s1822_s17 + $0xb8] sm:$0xff] %vm721_vm0, %v712_v19  ;;  %744 = vst.msk [vmem:[%s1822_s17 + $0xb0] sm:$0xff] %vm721_vm0, %v711_v20 }
 0x207   : > { %v634_v21 = vpop.xlane.xlu1 %633  ;;  %v632_v22 = vpop.xlane.xlu0 %631 }
 0x208   : > { %v694_v23 = vadd.f32 %v1817_v60, %v634_v21  ;;  %v693_v24 = vadd.f32 %v1817_v60, %v632_v22 }
 0x20a   : > { %727 = vst.msk [vmem:[%s1822_s17 + $0x28] sm:$0xff] %vm721_vm0, %v694_v23  ;;  %726 = vst.msk [vmem:[%s1822_s17 + $0x20] sm:$0xff] %vm721_vm0, %v693_v24 }
 0x20b   : > { %v666_v25 = vpop.xlane.xlu1 %665  ;;  %v664_v26 = vpop.xlane.xlu0 %663 }
 0x20c   : > { %v710_v27 = vadd.f32 %v1817_v60, %v666_v25  ;;  %v709_v28 = vadd.f32 %v1817_v60, %v664_v26 }
 0x20e   : > { %743 = vst.msk [vmem:[%s1822_s17 + $0xa8] sm:$0xff] %vm721_vm0, %v710_v27  ;;  %742 = vst.msk [vmem:[%s1822_s17 + $0xa0] sm:$0xff] %vm721_vm0, %v709_v28 }
 0x20f   : > { %v646_v29 = vpop.xlane.xlu1 %645  ;;  %v644_v30 = vpop.xlane.xlu0 %643 }
 0x210   : > { %v700_v31 = vadd.f32 %v1817_v60, %v646_v29  ;;  %v699_v32 = vadd.f32 %v1817_v60, %v644_v30 }
 0x212   : > { %733 = vst.msk [vmem:[%s1822_s17 + $0x58] sm:$0xff] %vm721_vm0, %v700_v31  ;;  %732 = vst.msk [vmem:[%s1822_s17 + $0x50] sm:$0xff] %vm721_vm0, %v699_v32 }
 0x213   : > { %v678_v33 = vpop.xlane.xlu1 %677  ;;  %v676_v34 = vpop.xlane.xlu0 %675 }
 0x214   : > { %v716_v35 = vadd.f32 %v1817_v60, %v678_v33  ;;  %v715_v36 = vadd.f32 %v1817_v60, %v676_v34 }
 0x216   : > { %749 = vst.msk [vmem:[%s1822_s17 + $0xd8] sm:$0xff] %vm721_vm0, %v716_v35  ;;  %748 = vst.msk [vmem:[%s1822_s17 + $0xd0] sm:$0xff] %vm721_vm0, %v715_v36 }
 0x217   : > { %v642_v37 = vpop.xlane.xlu1 %641  ;;  %v640_v38 = vpop.xlane.xlu0 %639 }
 0x218   : > { %v698_v39 = vadd.f32 %v1817_v60, %v642_v37  ;;  %v697_v40 = vadd.f32 %v1817_v60, %v640_v38 }
 0x21a   : > { %731 = vst.msk [vmem:[%s1822_s17 + $0x48] sm:$0xff] %vm721_vm0, %v698_v39  ;;  %730 = vst.msk [vmem:[%s1822_s17 + $0x40] sm:$0xff] %vm721_vm0, %v697_v40 }
 0x21b   : > { %v674_v41 = vpop.xlane.xlu1 %673  ;;  %v672_v42 = vpop.xlane.xlu0 %671 }
 0x21c   : > { %v714_v43 = vadd.f32 %v1817_v60, %v674_v41  ;;  %v713_v44 = vadd.f32 %v1817_v60, %v672_v42 }
 0x21e   : > { %747 = vst.msk [vmem:[%s1822_s17 + $0xc8] sm:$0xff] %vm721_vm0, %v714_v43  ;;  %746 = vst.msk [vmem:[%s1822_s17 + $0xc0] sm:$0xff] %vm721_vm0, %v713_v44 }
 0x21f   : > { %v654_v45 = vpop.xlane.xlu1 %653  ;;  %v652_v46 = vpop.xlane.xlu0 %651 }
 0x220   : > { %v704_v47 = vadd.f32 %v1817_v60, %v654_v45  ;;  %v703_v48 = vadd.f32 %v1817_v60, %v652_v46 }
 0x222   : > { %737 = vst.msk [vmem:[%s1822_s17 + $0x78] sm:$0xff] %vm721_vm0, %v704_v47  ;;  %736 = vst.msk [vmem:[%s1822_s17 + $0x70] sm:$0xff] %vm721_vm0, %v703_v48 }
 0x223   : > { %v650_v49 = vpop.xlane.xlu1 %649  ;;  %v648_v50 = vpop.xlane.xlu0 %647 }
 0x224   : > { %v702_v51 = vadd.f32 %v1817_v60, %v650_v49  ;;  %v701_v52 = vadd.f32 %v1817_v60, %v648_v50 }
 0x226   : > { %735 = vst.msk [vmem:[%s1822_s17 + $0x68] sm:$0xff] %vm721_vm0, %v702_v51  ;;  %734 = vst.msk [vmem:[%s1822_s17 + $0x60] sm:$0xff] %vm721_vm0, %v701_v52 }
 0x227   : > { %v682_v53 = vpop.xlane.xlu1 %681  ;;  %v680_v54 = vpop.xlane.xlu0 %679 }
 0x228   : > { %v718_v55 = vadd.f32 %v1817_v60, %v682_v53  ;;  %v717_v57 = vadd.f32 %v1817_v60, %v680_v54  ;;  %760 = sbr.rel (!%p2079_p6) target bundleno = 615 (0x267), region = 52 }
 0x22a   : > { %751 = vst.msk [vmem:[%s1822_s17 + $0xe8] sm:$0xff] %vm721_vm0, %v718_v55  ;;  %750 = vst.msk [vmem:[%s1822_s17 + $0xe0] sm:$0xff] %vm721_vm0, %v717_v57 }
 0x22b   : > { %v686_v59 = vpop.xlane.xlu1 %685  ;;  %v684_v58 = vpop.xlane.xlu0 %683 }
 0x22c   : > { %v720_v56 = vadd.f32 %v1817_v60, %v686_v59  ;;  %v719_v61 = vadd.f32 %v1817_v60, %v684_v58 }
 0x22e   : > { %753 = vst.msk [vmem:[%s1822_s17 + $0xf8] sm:$0xff] %vm721_vm0, %v720_v56  ;;  %752 = vst.msk [vmem:[%s1822_s17 + $0xf0] sm:$0xff] %vm721_vm0, %v719_v61 }
 0x22f   : > { %s2092_s25 = smov (!%p763_p7, %s762_s25), 32 }
 0x230   : > { %s1141_s11 = sshll.u32 %s2092_s25, 7 }
 0x231   : > { %p1144_p9 = scmp.eq.s32.totalorder %s1141_s11, 0 }
 0x232   : > { %s1931_s30 = sshrl.u32 (!%p1144_p9), %s2092_s25, 5 }
 0x233   : > { %771 = sbr.rel (%p1144_p9) target bundleno = 615 (0x267), region = 56  ;;  %p1145_p12 = scmp.le.s32.totalorder (!%p1144_p9), %s1931_s30, 0 }
 0x23a   : > { %1058 = sbr.rel (%p1145_p12) target bundleno = 594 (0x252), region = 138  ;;  %s2080_s4 = smov (!%p1145_p12), %s1925_s10 }
 0x23b   : > { %s2081_s9 = smov (!%p1145_p12), %s1822_s17  ;;  %s1940_s8 = smov (!%p1145_p12), 0  }
 0x23c   : > { %s1942_s28 = smov (!%p1145_p12), 0  }
 0x241 LB: >> { %v895_v60 = vld [vmem:[%s1502_s9] sm:$0xff]  ;;  %v897_v62 = vld [vmem:[%s1502_s9 + $0x8] sm:$0xff]  ;;  %v899_v63 = vld [vmem:[%s1502_s9 + $0x10] sm:$0xff]  ;;  %s959_s14 = sadd.s32 1, %s1506_s8  ;;  %s889_s28 = sadd.s32 1, %s1510_s28   ;;  %s1510_s28 = sphi %s1942_s28, %s889_s28   ;;  %s1506_s8 = sphi %s1940_s8, %s2084_s8   ;;  %s1502_s9 = sphi %s2081_s9, %s2083_s9   ;;  %s1498_s4 = sphi %s2080_s4, %s2082_s4  }
 0x242   : >> { %896 = vst [vmem:[%s1498_s4] sm:$0xff] %v895_v60  ;;  %898 = vst [vmem:[%s1498_s4 + $0x8] sm:$0xff] %v897_v62  ;;  %v901_v0 = vld [vmem:[%s1502_s9 + $0x18] sm:$0xff]  ;;  %v903_v2 = vld [vmem:[%s1502_s9 + $0x20] sm:$0xff]  ;;  %p960_p0 = scmp.ge.s32.totalorder %s959_s14, %s1931_s30  ;;  %p888_p2 = scmp.ge.s32.totalorder %s889_s28, %s1931_s30 }
 0x243   : >> { %900 = vst [vmem:[%s1498_s4 + $0x10] sm:$0xff] %v899_v63  ;;  %v905_v1 = vld [vmem:[%s1502_s9 + $0x28] sm:$0xff]  ;;  %902 = vst [vmem:[%s1498_s4 + $0x18] sm:$0xff] %v901_v0  ;;  %v907_v3 = vld [vmem:[%s1502_s9 + $0x30] sm:$0xff] }
 0x244   : >> { %904 = vst [vmem:[%s1498_s4 + $0x20] sm:$0xff] %v903_v2  ;;  %906 = vst [vmem:[%s1498_s4 + $0x28] sm:$0xff] %v905_v1  ;;  %v909_v4 = vld [vmem:[%s1502_s9 + $0x38] sm:$0xff]  ;;  %v911_v5 = vld [vmem:[%s1502_s9 + $0x40] sm:$0xff]  ;;  %s2094_s14 = smov (%p960_p0, %s959_s14), 0 }
 0x245   : >> { %908 = vst [vmem:[%s1498_s4 + $0x30] sm:$0xff] %v907_v3  ;;  %910 = vst [vmem:[%s1498_s4 + $0x38] sm:$0xff] %v909_v4  ;;  %v913_v6 = vld [vmem:[%s1502_s9 + $0x48] sm:$0xff]  ;;  %v915_v7 = vld [vmem:[%s1502_s9 + $0x50] sm:$0xff]  ;;  %s1146_s15 = sshll.u32 %s2094_s14, 8  ;;  %s2084_s8 = smov %s2094_s14 }
 0x246   : >> { %912 = vst [vmem:[%s1498_s4 + $0x40] sm:$0xff] %v911_v5  ;;  %v917_v8 = vld [vmem:[%s1502_s9 + $0x58] sm:$0xff]  ;;  %914 = vst [vmem:[%s1498_s4 + $0x48] sm:$0xff] %v913_v6  ;;  %v919_v9 = vld [vmem:[%s1502_s9 + $0x60] sm:$0xff]  ;;  %s1998_s18 = scalar_lea.vmem %s1822_s17, %s1146_s15 [#allocation7]   ;;  %s965_s19 = scalar_lea.vmem %s1925_s10, %s1146_s15  }
 0x247   : >> { %916 = vst [vmem:[%s1498_s4 + $0x50] sm:$0xff] %v915_v7  ;;  %918 = vst [vmem:[%s1498_s4 + $0x58] sm:$0xff] %v917_v8  ;;  %v921_v10 = vld [vmem:[%s1502_s9 + $0x68] sm:$0xff]  ;;  %v923_v11 = vld [vmem:[%s1502_s9 + $0x70] sm:$0xff] }
 0x248   : >> { %920 = vst [vmem:[%s1498_s4 + $0x60] sm:$0xff] %v919_v9  ;;  %922 = vst [vmem:[%s1498_s4 + $0x68] sm:$0xff] %v921_v10  ;;  %v925_v12 = vld [vmem:[%s1502_s9 + $0x78] sm:$0xff]  ;;  %v927_v13 = vld [vmem:[%s1502_s9 + $0x80] sm:$0xff] }
 0x249   : >> { %924 = vst [vmem:[%s1498_s4 + $0x70] sm:$0xff] %v923_v11  ;;  %v929_v14 = vld [vmem:[%s1502_s9 + $0x88] sm:$0xff]  ;;  %926 = vst [vmem:[%s1498_s4 + $0x78] sm:$0xff] %v925_v12  ;;  %v931_v15 = vld [vmem:[%s1502_s9 + $0x90] sm:$0xff] }
 0x24a   : >> { %928 = vst [vmem:[%s1498_s4 + $0x80] sm:$0xff] %v927_v13  ;;  %930 = vst [vmem:[%s1498_s4 + $0x88] sm:$0xff] %v929_v14  ;;  %v933_v16 = vld [vmem:[%s1502_s9 + $0x98] sm:$0xff]  ;;  %v935_v17 = vld [vmem:[%s1502_s9 + $0xa0] sm:$0xff] }
 0x24b   : >> { %932 = vst [vmem:[%s1498_s4 + $0x90] sm:$0xff] %v931_v15  ;;  %934 = vst [vmem:[%s1498_s4 + $0x98] sm:$0xff] %v933_v16  ;;  %v937_v18 = vld [vmem:[%s1502_s9 + $0xa8] sm:$0xff]  ;;  %v939_v19 = vld [vmem:[%s1502_s9 + $0xb0] sm:$0xff]  ;;  %891 = sbr.rel (!%p888_p2) target bundleno = 577 (0x241), region = 144 }
 0x24c   : >> { %936 = vst [vmem:[%s1498_s4 + $0xa0] sm:$0xff] %v935_v17  ;;  %v941_v20 = vld [vmem:[%s1502_s9 + $0xb8] sm:$0xff]  ;;  %938 = vst [vmem:[%s1498_s4 + $0xa8] sm:$0xff] %v937_v18  ;;  %v943_v21 = vld [vmem:[%s1502_s9 + $0xc0] sm:$0xff] }
 0x24d   : >> { %940 = vst [vmem:[%s1498_s4 + $0xb0] sm:$0xff] %v939_v19  ;;  %942 = vst [vmem:[%s1498_s4 + $0xb8] sm:$0xff] %v941_v20  ;;  %v945_v22 = vld [vmem:[%s1502_s9 + $0xc8] sm:$0xff]  ;;  %v947_v23 = vld [vmem:[%s1502_s9 + $0xd0] sm:$0xff] }
 0x24e   : >> { %944 = vst [vmem:[%s1498_s4 + $0xc0] sm:$0xff] %v943_v21  ;;  %946 = vst [vmem:[%s1498_s4 + $0xc8] sm:$0xff] %v945_v22  ;;  %v949_v24 = vld [vmem:[%s1502_s9 + $0xd8] sm:$0xff]  ;;  %v951_v25 = vld [vmem:[%s1502_s9 + $0xe0] sm:$0xff] }
 0x24f   : >> { %948 = vst [vmem:[%s1498_s4 + $0xd0] sm:$0xff] %v947_v23  ;;  %v953_v26 = vld [vmem:[%s1502_s9 + $0xe8] sm:$0xff]  ;;  %950 = vst [vmem:[%s1498_s4 + $0xd8] sm:$0xff] %v949_v24  ;;  %v955_v27 = vld [vmem:[%s1502_s9 + $0xf0] sm:$0xff] }
 0x250   : >> { %952 = vst [vmem:[%s1498_s4 + $0xe0] sm:$0xff] %v951_v25  ;;  %954 = vst [vmem:[%s1498_s4 + $0xe8] sm:$0xff] %v953_v26  ;;  %v957_v28 = vld [vmem:[%s1502_s9 + $0xf8] sm:$0xff]  ;;  %s2083_s9 = smov %s1998_s18 }
 0x251   : >> { %956 = vst [vmem:[%s1498_s4 + $0xf0] sm:$0xff] %v955_v27  ;;  %958 = vst [vmem:[%s1498_s4 + $0xf8] sm:$0xff] %v957_v28  ;;  %s2082_s4 = smov %s965_s19 }
 0x252 PF: > { %s2039_s29 = sand.u32 31, %s2092_s25   ;;  %s1158_s6 = sshll.u32 %s1931_s30, 8 }
 0x253   : > { %s970_s12 = scalar_lea.vmem %s1822_s17, %s1158_s6 [#allocation7]   ;;  %s972_s13 = scalar_lea.vmem %s1925_s10, %s1158_s6  }
 0x254   : > { %p1151_p4 = scmp.le.s32.totalorder %s2039_s29, 0 }
 0x255   : > { %s1512_s16 = smov (!%p1151_p4), %s972_s13   ;;  %s1516_s20 = smov (!%p1151_p4), %s970_s12  }
 0x256   : > { %1072 = sbr.rel (%p1151_p4) target bundleno = 615 (0x267), region = 149  ;;  %s1520_s23 = smov (!%p1151_p4), 0  }
 0x257   : > { %s1524_s26 = smov (!%p1151_p4), 0  }
 0x25d LB: >> { %v982_v29 = vld [vmem:[%s1518_s20] sm:$0xff]  ;;  %s984_s25 = sadd.s32 1, %s1522_s23  ;;  %s976_s26 = sadd.s32 1, %s1526_s26   ;;  %s1526_s26 = sphi %s1524_s26, %s976_s26   ;;  %s1522_s23 = sphi %s1520_s23, %s1521_s23   ;;  %s1518_s20 = sphi %s1516_s20, %s989_s20   ;;  %s1514_s16 = sphi %s1512_s16, %s990_s16  }
 0x25e   : >> { %983 = vst [vmem:[%s1514_s16] sm:$0xff] %v982_v29  ;;  %p985_p8 = scmp.ge.s32.totalorder %s984_s25, %s2039_s29  ;;  %p975_p10 = scmp.ge.s32.totalorder %s976_s26, %s2039_s29 }
 0x260   : >> { %s2096_s25 = smov (%p985_p8, %s984_s25), 0  ;;  %978 = sbr.rel (!%p975_p10) target bundleno = 605 (0x25d), region = 155 }
 0x261   : >> { %s1152_s17 = sshll.u32 %s2096_s25, 3  ;;  %s1521_s23 = smov %s2096_s25  }
 0x262   : >> { %s989_s20 = scalar_lea.vmem %s970_s12, %s1152_s17 [#allocation7]   ;;  %s990_s16 = scalar_lea.vmem %s972_s13, %s1152_s17  }
 0x267 PF: > { %p17_p13 = scmp.ge.s32.totalorder %s1589_s24, 5   ;;  %s2085_s20 = smov %s1486_s21 }
 0x268   : > { %s2086_s21 = smov %s1490_s22  ;;  %s2087_s22 = smov %s1599_s27 }
 0x269   : > { %s2088_s23 = smov %s1589_s24  ;;  %19 = sbr.rel (!%p17_p13) target bundleno = 6 (0x6), region = 166 }
 0x270   :  { %1006 = vsyncpa [#allocation4], 1 }
 0x271   :  { %1008 = vsyncpa [#allocation4 + $0x1], 1 }
 0x272   :  { %1009 = vsyncpa [#allocation6], 1 }

</bundles_post_ra>
